<compile_context>
chip_gen: v7x
topology: tpu7x:2x2x1
jax: 0.10.0
libtpu: 0.0.40
codegen_flags: <defaults>
</compile_context>

<pallas_src>
import functools

import jax
import jax.numpy as jnp
from jax.experimental import pallas as pl
from jax.experimental.pallas import tpu as pltpu


def _round_up(x, m):
    return (x + m - 1) // m * m


def _cdiv(a, b):
    return (a + b - 1) // b


_VMEM_LIMIT = 48 * 1024 * 1024      # fits v5e/v6e (128 MiB) and v7x (64 MiB)


# ---------------------------------------------------------------------------
# Kernel 1: two graph-diffusion hops   x1 = A^T @ x0 ,  x2 = A^T @ x1
# x0 layout: (Vp, Cp*M_pad) -- Vp is the (small) contraction dim, the folded
# Cp*M_pad axis is the wide lane dim, tiled by the grid (lane-dense blocks).
# ---------------------------------------------------------------------------
def _diffusion_kernel(at_ref, x_ref, x1_ref, x2_ref):
    at = at_ref[...]                                   # (Vp, Vp) = A^T, resident
    x0 = x_ref[...]                                    # (Vp, tcm)
    x1 = jnp.dot(at, x0, preferred_element_type=jnp.float32)
    x1_ref[...] = x1.astype(x1_ref.dtype)
    # Second hop from the (compute-dtype-rounded) x1 -- identical to what
    # kernel 2 will read back, so the two kernels stay consistent.
    x2 = jnp.dot(at, x1.astype(at.dtype), preferred_element_type=jnp.float32)
    x2_ref[...] = x2.astype(x2_ref.dtype)


# ---------------------------------------------------------------------------
# Kernel 2: fused concat + 1x1 conv + bias.
# For each node v in the tv-block: build the (3Cp, tm) slab in VMEM scratch
# and do ONE (Cout, 3Cp) @ (3Cp, tm) MXU dot.  Output blocks are lane-dense.
# ---------------------------------------------------------------------------
def _mlp_kernel(w_ref, b_ref, x0_ref, x1_ref, x2_ref, o_ref, xcat_ref, *, tv, cp):
    w = w_ref[...]                                     # (Cout, 3Cp), resident
    b = b_ref[...]                                     # (Cout, 1) f32, resident
    for v in range(tv):                                # small static unroll
        xcat_ref[v, 0:cp, :] = x0_ref[v]
        xcat_ref[v, cp:2 * cp, :] = x1_ref[v]
        xcat_ref[v, 2 * cp:3 * cp, :] = x2_ref[v]
    for v in range(tv):
        acc = jnp.dot(w, xcat_ref[v], preferred_element_type=jnp.float32)
        o_ref[v] = (acc + b).astype(o_ref.dtype)


def gcn_forward(x, A, w_mlp, b_mlp, *, compute_dtype=jnp.bfloat16):
    """Pallas equivalent of gcn.forward(x, [A]) with support_len=1, order=2.

    x      : (N, V, L, C)   layout fed to the torch module (before permute)
    A      : (V, V)         single support
    w_mlp  : (Cout, 3*C)    1x1-conv weight (squeezed)
    b_mlp  : (Cout,)        1x1-conv bias
    returns: (N, V, L, Cout)   in x.dtype
    """
    N, V, L, C = x.shape
    Cout = w_mlp.shape[0]
    assert A.shape == (V, V)
    assert w_mlp.shape == (Cout, 3 * C)

    itemsize = jnp.dtype(compute_dtype).itemsize
    # Padded extents: V,C -> multiples of 8 (sublane), M -> multiple of the
    # lane tile (so kernel-2 blocks are always full, lane-dense tiles).
    Vp = _round_up(V, 8)
    Cp = _round_up(C, 8)
    M = N * L
    M_pad = _round_up(M, 128)
    tm = min(512, M_pad)                     # kernel-2 lane tile (review: ~512)
    M_pad = _round_up(M_pad, tm)

    # ---- entry layout change: (N, V, L, C) -> (Vp, Cp, M_pad), compute dtype
    xt = jnp.transpose(x, (1, 3, 0, 2)).reshape(V, C, M).astype(compute_dtype)
    xt = jnp.pad(xt, ((0, Vp - V), (0, Cp - C), (0, M_pad - M)))

    # A^T padded with zero rows/cols (padded nodes diffuse to exactly zero).
    at = jnp.pad(jnp.transpose(A).astype(compute_dtype),
                 ((0, Vp - V), (0, Vp - V)))

    # 1x1-conv weight: per-hop (Cout, C) slices zero-padded to (Cout, Cp),
    # re-concatenated to (Cout, 3Cp) so one wide dot matches the padded slab.
    w_hops = [jnp.pad(w_mlp[:, h * C:(h + 1) * C], ((0, 0), (0, Cp - C)))
              for h in range(3)]
    wp = jnp.concatenate(w_hops, axis=1).astype(compute_dtype)   # (Cout, 3Cp)
    b2 = b_mlp.reshape(Cout, 1).astype(jnp.float32)              # bias kept f32

    # ---- kernel 1: graph diffusion (both hops, lane-dense 2-D matmuls) -----
    CM = Cp * M_pad
    x0f = xt.reshape(Vp, CM)                 # free reshape (same HBM bytes)
    diff_cap = 8192 if itemsize <= 2 else 4096   # v7x 64 MiB VMEM budget
    tcm = min(diff_cap, _round_up(_cdiv(CM, 2), 128))  # >=2 steps for 2-TC v7x
    n_diff = _cdiv(CM, tcm)                  # ragged last block is masked

    flops1 = 2 * 2 * Vp * Vp * CM
    bytes1 = (Vp * Vp + 3 * Vp * CM) * itemsize
    x1f, x2f = pl.pallas_call(
        _diffusion_kernel,
        out_shape=(jax.ShapeDtypeStruct((Vp, CM), compute_dtype),
                   jax.ShapeDtypeStruct((Vp, CM), compute_dtype)),
        grid=(n_diff,),
        in_specs=[
            pl.BlockSpec((Vp, Vp), lambda i: (0, 0)),       # A^T, resident
            pl.BlockSpec((Vp, tcm), lambda i: (0, i)),
        ],
        out_specs=(
            pl.BlockSpec((Vp, tcm), lambda i: (0, i)),
            pl.BlockSpec((Vp, tcm), lambda i: (0, i)),
        ),
        compiler_params=pltpu.CompilerParams(
            dimension_semantics=("parallel",),
            vmem_limit_bytes=_VMEM_LIMIT),
        cost_estimate=pl.CostEstimate(flops=flops1, transcendentals=0,
                                      bytes_accessed=bytes1),
    )(at, x0f)

    # ---- kernel 2: concat + 1x1 conv + bias --------------------------------
    x0v = xt                                   # (Vp, Cp, M_pad)
    x1v = x1f.reshape(Vp, Cp, M_pad)           # free reshapes (same layout)
    x2v = x2f.reshape(Vp, Cp, M_pad)

    tv = 8                                     # V padded -> always full blocks
    grid2 = (Vp // tv, M_pad // tm)

    flops2 = 2 * Vp * M_pad * (3 * Cp) * Cout
    bytes2 = (3 * Vp * Cp * M_pad + Vp * Cout * M_pad
              + Cout * 3 * Cp) * itemsize + Cout * 4
    out = pl.pallas_call(
        functools.partial(_mlp_kernel, tv=tv, cp=Cp),
        out_shape=jax.ShapeDtypeStruct((Vp, Cout, M_pad), compute_dtype),
        grid=grid2,
        in_specs=[
            pl.BlockSpec((Cout, 3 * Cp), lambda vi, mi: (0, 0)),   # W, resident
            pl.BlockSpec((Cout, 1), lambda vi, mi: (0, 0)),        # bias
            pl.BlockSpec((tv, Cp, tm), lambda vi, mi: (vi, 0, mi)),
            pl.BlockSpec((tv, Cp, tm), lambda vi, mi: (vi, 0, mi)),
            pl.BlockSpec((tv, Cp, tm), lambda vi, mi: (vi, 0, mi)),
        ],
        out_specs=pl.BlockSpec((tv, Cout, tm), lambda vi, mi: (vi, 0, mi)),
        scratch_shapes=[pltpu.VMEM((tv, 3 * Cp, tm), compute_dtype)],
        compiler_params=pltpu.CompilerParams(
            dimension_semantics=("parallel", "parallel"),
            vmem_limit_bytes=_VMEM_LIMIT),
        cost_estimate=pl.CostEstimate(flops=flops2, transcendentals=0,
                                      bytes_accessed=bytes2),
    )(wp, b2, x0v, x1v, x2v)

    # TODO(synk): F.dropout is stochastic; eval-mode (identity) is applied here.
    out = out[:V, :, :M].reshape(V, Cout, N, L)
    return jnp.transpose(out, (2, 0, 3, 1)).astype(x.dtype)   # (N, V, L, Cout)


def gcn_reference(x, A, w_mlp, b_mlp):
    """Pure-JAX reference matching the torch gcn forward (eval mode)."""
    h0 = jnp.transpose(x, (0, 3, 1, 2))                            # (N, C, V, L)
    h1 = jnp.einsum('ncvl,vw->ncwl', h0, A, precision='highest')
    h2 = jnp.einsum('ncvl,vw->ncwl', h1, A, precision='highest')
    h = jnp.concatenate([h0, h1, h2], axis=1)                      # (N, 3C, V, L)
    o = jnp.einsum('oc,ncvl->novl', w_mlp, h, precision='highest')
    o = o + b_mlp[None, :, None, None]
    return jnp.transpose(o, (0, 2, 3, 1))                          # (N, V, L, Cout)


if __name__ == "__main__":
    key = jax.random.PRNGKey(0)
    kx, ka, kw, kb = jax.random.split(key, 4)

    N, V, L, C_in, C_out = 2, 16, 8, 4, 8                 # small demo shapes
    x = jax.random.normal(kx, (N, V, L, C_in), dtype=jnp.float32)
    A = jax.random.normal(ka, (V, V), dtype=jnp.float32) / jnp.sqrt(V)
    w_mlp = 0.1 * jax.random.normal(kw, (C_out, 3 * C_in), dtype=jnp.float32)
    b_mlp = 0.1 * jax.random.normal(kb, (C_out,), dtype=jnp.float32)

    ref = gcn_reference(x, A, w_mlp, b_mlp)

    fwd = jax.jit(gcn_forward, static_argnames="compute_dtype")

    # Recommended (v6e/v7x) bf16 path -- looser tolerance per bf16 rounding.
    out_bf16 = jax.block_until_ready(fwd(x, A, w_mlp, b_mlp,
                                         compute_dtype=jnp.bfloat16))
    assert out_bf16.shape == ref.shape == (N, V, L, C_out)
    assert jnp.allclose(out_bf16, ref, atol=1e-1, rtol=1e-1), "bf16 mismatch"

    # Full-precision path -- tight tolerance.
    out_f32 = jax.block_until_ready(fwd(x, A, w_mlp, b_mlp,
                                        compute_dtype=jnp.float32))
    assert out_f32.shape == ref.shape
    assert jnp.allclose(out_f32, ref, atol=1e-3, rtol=1e-3), "f32 mismatch"

    print("KERNEL_OK")
</pallas_src>

<mosaic_0001>
module attributes {stable_mosaic.version = 11 : i64} {
  func.func @_diffusion_kernel(%arg0: i32, %arg1: memref<16x16xbf16, #tpu.memory_space<vmem>>, %arg2: memref<16x512xbf16, #tpu.memory_space<vmem>>, %arg3: memref<16x512xbf16, #tpu.memory_space<vmem>>, %arg4: memref<16x512xbf16, #tpu.memory_space<vmem>>) attributes {dimension_semantics = [#tpu.dimension_semantics<parallel>], iteration_bounds = array<i64: 2>, scalar_prefetch = 0 : i64, scratch_operands = 0 : i64, tpu.core_type = #tpu.core_type<tc>, window_params = [{pipeline_mode = #tpu.pipeline_mode<synchronous>, transform_indices = @transform_0, window_bounds = array<i64: 16, 16>}, {transform_indices = @transform_1, window_bounds = array<i64: 16, 512>}, {transform_indices = @transform_2, window_bounds = array<i64: 16, 512>}, {transform_indices = @transform_3, window_bounds = array<i64: 16, 512>}]} {
    %c0 = arith.constant 0 : index
    %c0_0 = arith.constant 0 : index
    %0 = vector.load %arg1[%c0, %c0_0] : memref<16x16xbf16, #tpu.memory_space<vmem>>, vector<16x16xbf16>
    %c0_1 = arith.constant 0 : index
    %c0_2 = arith.constant 0 : index
    %1 = vector.load %arg2[%c0_1, %c0_2] : memref<16x512xbf16, #tpu.memory_space<vmem>>, vector<16x512xbf16>
    %cst = arith.constant dense<0.000000e+00> : vector<16x512xf32>
    %2 = tpu.matmul %0, %1, %cst {dimension_numbers = #tpu.dot_dimension_numbers<[1], [0], [0], [1], [0, 0, 1, 1], [], []>} : vector<16x16xbf16>, vector<16x512xbf16>, vector<16x512xf32> -> vector<16x512xf32>
    %3 = arith.truncf %2 : vector<16x512xf32> to vector<16x512xbf16>
    %c0_3 = arith.constant 0 : index
    %c0_4 = arith.constant 0 : index
    %4 = vector.load %arg3[%c0_3, %c0_4] : memref<16x512xbf16, #tpu.memory_space<vmem>>, vector<16x512xbf16>
    tpu.vector_store %arg3[%c0_3, %c0_4], %3 {strides = array<i32>} : memref<16x512xbf16, #tpu.memory_space<vmem>>, vector<16x512xbf16>,
    %5 = arith.truncf %2 : vector<16x512xf32> to vector<16x512xbf16>
    %cst_5 = arith.constant dense<0.000000e+00> : vector<16x512xf32>
    %6 = tpu.matmul %0, %5, %cst_5 {dimension_numbers = #tpu.dot_dimension_numbers<[1], [0], [0], [1], [0, 0, 1, 1], [], []>} : vector<16x16xbf16>, vector<16x512xbf16>, vector<16x512xf32> -> vector<16x512xf32>
    %7 = arith.truncf %6 : vector<16x512xf32> to vector<16x512xbf16>
    %c0_6 = arith.constant 0 : index
    %c0_7 = arith.constant 0 : index
    %8 = vector.load %arg4[%c0_6, %c0_7] : memref<16x512xbf16, #tpu.memory_space<vmem>>, vector<16x512xbf16>
    tpu.vector_store %arg4[%c0_6, %c0_7], %7 {strides = array<i32>} : memref<16x512xbf16, #tpu.memory_space<vmem>>, vector<16x512xbf16>,
    return
  }
  func.func @transform_0(%arg0: i32) -> (i32, i32) {
    %c0_i32 = arith.constant 0 : i32
    %c0_i32_0 = arith.constant 0 : i32
    %c0_i32_1 = arith.constant 0 : i32
    return %c0_i32, %c0_i32_0 : i32, i32
  }
  func.func @transform_1(%arg0: i32) -> (i32, i32) {
    %c0_i32 = arith.constant 0 : i32
    %c0_i32_0 = arith.constant 0 : i32
    return %c0_i32, %arg0 : i32, i32
  }
  func.func @transform_2(%arg0: i32) -> (i32, i32) {
    %c0_i32 = arith.constant 0 : i32
    %c0_i32_0 = arith.constant 0 : i32
    return %c0_i32, %arg0 : i32, i32
  }
  func.func @transform_3(%arg0: i32) -> (i32, i32) {
    %c0_i32 = arith.constant 0 : i32
    %c0_i32_0 = arith.constant 0 : i32
    return %c0_i32, %arg0 : i32, i32
  }
}

module attributes {stable_mosaic.version = 11 : i64} {
  func.func @_mlp_kernel(%arg0: i32, %arg1: i32, %arg2: memref<8x24xbf16, #tpu.memory_space<vmem>>, %arg3: memref<8x1xf32, #tpu.memory_space<vmem>>, %arg4: memref<8x8x128xbf16, #tpu.memory_space<vmem>>, %arg5: memref<8x8x128xbf16, #tpu.memory_space<vmem>>, %arg6: memref<8x8x128xbf16, #tpu.memory_space<vmem>>, %arg7: memref<8x8x128xbf16, #tpu.memory_space<vmem>>, %arg8: memref<8x24x128xbf16, #tpu.memory_space<vmem>>) attributes {dimension_semantics = [#tpu.dimension_semantics<parallel>, #tpu.dimension_semantics<parallel>], iteration_bounds = array<i64: 2, 1>, scalar_prefetch = 0 : i64, scratch_operands = 1 : i64, tpu.core_type = #tpu.core_type<tc>, window_params = [{pipeline_mode = #tpu.pipeline_mode<synchronous>, transform_indices = @transform_0, window_bounds = array<i64: 8, 24>}, {pipeline_mode = #tpu.pipeline_mode<synchronous>, transform_indices = @transform_1, window_bounds = array<i64: 8, 1>}, {transform_indices = @transform_2, window_bounds = array<i64: 8, 8, 128>}, {transform_indices = @transform_3, window_bounds = array<i64: 8, 8, 128>}, {transform_indices = @transform_4, window_bounds = array<i64: 8, 8, 128>}, {transform_indices = @transform_5, window_bounds = array<i64: 8, 8, 128>}]} {
    %c0 = arith.constant 0 : index
    %c0_0 = arith.constant 0 : index
    %0 = vector.load %arg2[%c0, %c0_0] : memref<8x24xbf16, #tpu.memory_space<vmem>>, vector<8x24xbf16>
    %c0_1 = arith.constant 0 : index
    %c0_2 = arith.constant 0 : index
    %1 = vector.load %arg3[%c0_1, %c0_2] : memref<8x1xf32, #tpu.memory_space<vmem>>, vector<8x1xf32>
    %c0_3 = arith.constant 0 : index
    %c0_4 = arith.constant 0 : index
    %c0_5 = arith.constant 0 : index
    %2 = vector.load %arg4[%c0_3, %c0_4, %c0_5] : memref<8x8x128xbf16, #tpu.memory_space<vmem>>, vector<1x8x128xbf16>
    %3 = vector.shape_cast %2 : vector<1x8x128xbf16> to vector<8x128xbf16>
    %c0_6 = arith.constant 0 : index
    %c0_7 = arith.constant 0 : index
    %c0_8 = arith.constant 0 : index
    %4 = vector.load %arg8[%c0_6, %c0_7, %c0_8] : memref<8x24x128xbf16, #tpu.memory_space<vmem>>, vector<1x8x128xbf16>
    %5 = vector.shape_cast %4 : vector<1x8x128xbf16> to vector<8x128xbf16>
    %6 = vector.shape_cast %3 : vector<8x128xbf16> to vector<1x8x128xbf16>
    tpu.vector_store %arg8[%c0_6, %c0_7, %c0_8], %6 {strides = array<i32>} : memref<8x24x128xbf16, #tpu.memory_space<vmem>>, vector<1x8x128xbf16>,
    %c0_9 = arith.constant 0 : index
    %c0_10 = arith.constant 0 : index
    %c0_11 = arith.constant 0 : index
    %7 = vector.load %arg5[%c0_9, %c0_10, %c0_11] : memref<8x8x128xbf16, #tpu.memory_space<vmem>>, vector<1x8x128xbf16>
    %8 = vector.shape_cast %7 : vector<1x8x128xbf16> to vector<8x128xbf16>
    %c0_12 = arith.constant 0 : index
    %c8 = arith.constant 8 : index
    %c0_13 = arith.constant 0 : index
    %9 = vector.load %arg8[%c0_12, %c8, %c0_13] : memref<8x24x128xbf16, #tpu.memory_space<vmem>>, vector<1x8x128xbf16>
    %10 = vector.shape_cast %9 : vector<1x8x128xbf16> to vector<8x128xbf16>
    %11 = vector.shape_cast %8 : vector<8x128xbf16> to vector<1x8x128xbf16>
    tpu.vector_store %arg8[%c0_12, %c8, %c0_13], %11 {strides = array<i32>} : memref<8x24x128xbf16, #tpu.memory_space<vmem>>, vector<1x8x128xbf16>,
    %c0_14 = arith.constant 0 : index
    %c0_15 = arith.constant 0 : index
    %c0_16 = arith.constant 0 : index
    %12 = vector.load %arg6[%c0_14, %c0_15, %c0_16] : memref<8x8x128xbf16, #tpu.memory_space<vmem>>, vector<1x8x128xbf16>
    %13 = vector.shape_cast %12 : vector<1x8x128xbf16> to vector<8x128xbf16>
    %c0_17 = arith.constant 0 : index
    %c16 = arith.constant 16 : index
    %c0_18 = arith.constant 0 : index
    %14 = vector.load %arg8[%c0_17, %c16, %c0_18] : memref<8x24x128xbf16, #tpu.memory_space<vmem>>, vector<1x8x128xbf16>
    %15 = vector.shape_cast %14 : vector<1x8x128xbf16> to vector<8x128xbf16>
    %16 = vector.shape_cast %13 : vector<8x128xbf16> to vector<1x8x128xbf16>
    tpu.vector_store %arg8[%c0_17, %c16, %c0_18], %16 {strides = array<i32>} : memref<8x24x128xbf16, #tpu.memory_space<vmem>>, vector<1x8x128xbf16>,
    %c1 = arith.constant 1 : index
    %c0_19 = arith.constant 0 : index
    %c0_20 = arith.constant 0 : index
    %17 = vector.load %arg4[%c1, %c0_19, %c0_20] : memref<8x8x128xbf16, #tpu.memory_space<vmem>>, vector<1x8x128xbf16>
    %18 = vector.shape_cast %17 : vector<1x8x128xbf16> to vector<8x128xbf16>
    %c1_21 = arith.constant 1 : index
    %c0_22 = arith.constant 0 : index
    %c0_23 = arith.constant 0 : index
    %19 = vector.load %arg8[%c1_21, %c0_22, %c0_23] : memref<8x24x128xbf16, #tpu.memory_space<vmem>>, vector<1x8x128xbf16>
    %20 = vector.shape_cast %19 : vector<1x8x128xbf16> to vector<8x128xbf16>
    %21 = vector.shape_cast %18 : vector<8x128xbf16> to vector<1x8x128xbf16>
    tpu.vector_store %arg8[%c1_21, %c0_22, %c0_23], %21 {strides = array<i32>} : memref<8x24x128xbf16, #tpu.memory_space<vmem>>, vector<1x8x128xbf16>,
    %c1_24 = arith.constant 1 : index
    %c0_25 = arith.constant 0 : index
    %c0_26 = arith.constant 0 : index
    %22 = vector.load %arg5[%c1_24, %c0_25, %c0_26] : memref<8x8x128xbf16, #tpu.memory_space<vmem>>, vector<1x8x128xbf16>
    %23 = vector.shape_cast %22 : vector<1x8x128xbf16> to vector<8x128xbf16>
    %c1_27 = arith.constant 1 : index
    %c8_28 = arith.constant 8 : index
    %c0_29 = arith.constant 0 : index
    %24 = vector.load %arg8[%c1_27, %c8_28, %c0_29] : memref<8x24x128xbf16, #tpu.memory_space<vmem>>, vector<1x8x128xbf16>
    %25 = vector.shape_cast %24 : vector<1x8x128xbf16> to vector<8x128xbf16>
    %26 = vector.shape_cast %23 : vector<8x128xbf16> to vector<1x8x128xbf16>
    tpu.vector_store %arg8[%c1_27, %c8_28, %c0_29], %26 {strides = array<i32>} : memref<8x24x128xbf16, #tpu.memory_space<vmem>>, vector<1x8x128xbf16>,
    %c1_30 = arith.constant 1 : index
    %c0_31 = arith.constant 0 : index
    %c0_32 = arith.constant 0 : index
    %27 = vector.load %arg6[%c1_30, %c0_31, %c0_32] : memref<8x8x128xbf16, #tpu.memory_space<vmem>>, vector<1x8x128xbf16>
    %28 = vector.shape_cast %27 : vector<1x8x128xbf16> to vector<8x128xbf16>
    %c1_33 = arith.constant 1 : index
    %c16_34 = arith.constant 16 : index
    %c0_35 = arith.constant 0 : index
    %29 = vector.load %arg8[%c1_33, %c16_34, %c0_35] : memref<8x24x128xbf16, #tpu.memory_space<vmem>>, vector<1x8x128xbf16>
    %30 = vector.shape_cast %29 : vector<1x8x128xbf16> to vector<8x128xbf16>
    %31 = vector.shape_cast %28 : vector<8x128xbf16> to vector<1x8x128xbf16>
    tpu.vector_store %arg8[%c1_33, %c16_34, %c0_35], %31 {strides = array<i32>} : memref<8x24x128xbf16, #tpu.memory_space<vmem>>, vector<1x8x128xbf16>,
    %c2 = arith.constant 2 : index
    %c0_36 = arith.constant 0 : index
    %c0_37 = arith.constant 0 : index
    %32 = vector.load %arg4[%c2, %c0_36, %c0_37] : memref<8x8x128xbf16, #tpu.memory_space<vmem>>, vector<1x8x128xbf16>
    %33 = vector.shape_cast %32 : vector<1x8x128xbf16> to vector<8x128xbf16>
    %c2_38 = arith.constant 2 : index
    %c0_39 = arith.constant 0 : index
    %c0_40 = arith.constant 0 : index
    %34 = vector.load %arg8[%c2_38, %c0_39, %c0_40] : memref<8x24x128xbf16, #tpu.memory_space<vmem>>, vector<1x8x128xbf16>
    %35 = vector.shape_cast %34 : vector<1x8x128xbf16> to vector<8x128xbf16>
    %36 = vector.shape_cast %33 : vector<8x128xbf16> to vector<1x8x128xbf16>
    tpu.vector_store %arg8[%c2_38, %c0_39, %c0_40], %36 {strides = array<i32>} : memref<8x24x128xbf16, #tpu.memory_space<vmem>>, vector<1x8x128xbf16>,
    %c2_41 = arith.constant 2 : index
    %c0_42 = arith.constant 0 : index
    %c0_43 = arith.constant 0 : index
    %37 = vector.load %arg5[%c2_41, %c0_42, %c0_43] : memref<8x8x128xbf16, #tpu.memory_space<vmem>>, vector<1x8x128xbf16>
    %38 = vector.shape_cast %37 : vector<1x8x128xbf16> to vector<8x128xbf16>
    %c2_44 = arith.constant 2 : index
    %c8_45 = arith.constant 8 : index
    %c0_46 = arith.constant 0 : index
    %39 = vector.load %arg8[%c2_44, %c8_45, %c0_46] : memref<8x24x128xbf16, #tpu.memory_space<vmem>>, vector<1x8x128xbf16>
    %40 = vector.shape_cast %39 : vector<1x8x128xbf16> to vector<8x128xbf16>
    %41 = vector.shape_cast %38 : vector<8x128xbf16> to vector<1x8x128xbf16>
    tpu.vector_store %arg8[%c2_44, %c8_45, %c0_46], %41 {strides = array<i32>} : memref<8x24x128xbf16, #tpu.memory_space<vmem>>, vector<1x8x128xbf16>,
    %c2_47 = arith.constant 2 : index
    %c0_48 = arith.constant 0 : index
    %c0_49 = arith.constant 0 : index
    %42 = vector.load %arg6[%c2_47, %c0_48, %c0_49] : memref<8x8x128xbf16, #tpu.memory_space<vmem>>, vector<1x8x128xbf16>
    %43 = vector.shape_cast %42 : vector<1x8x128xbf16> to vector<8x128xbf16>
    %c2_50 = arith.constant 2 : index
    %c16_51 = arith.constant 16 : index
    %c0_52 = arith.constant 0 : index
    %44 = vector.load %arg8[%c2_50, %c16_51, %c0_52] : memref<8x24x128xbf16, #tpu.memory_space<vmem>>, vector<1x8x128xbf16>
    %45 = vector.shape_cast %44 : vector<1x8x128xbf16> to vector<8x128xbf16>
    %46 = vector.shape_cast %43 : vector<8x128xbf16> to vector<1x8x128xbf16>
    tpu.vector_store %arg8[%c2_50, %c16_51, %c0_52], %46 {strides = array<i32>} : memref<8x24x128xbf16, #tpu.memory_space<vmem>>, vector<1x8x128xbf16>,
    %c3 = arith.constant 3 : index
    %c0_53 = arith.constant 0 : index
    %c0_54 = arith.constant 0 : index
    %47 = vector.load %arg4[%c3, %c0_53, %c0_54] : memref<8x8x128xbf16, #tpu.memory_space<vmem>>, vector<1x8x128xbf16>
    %48 = vector.shape_cast %47 : vector<1x8x128xbf16> to vector<8x128xbf16>
    %c3_55 = arith.constant 3 : index
    %c0_56 = arith.constant 0 : index
    %c0_57 = arith.constant 0 : index
    %49 = vector.load %arg8[%c3_55, %c0_56, %c0_57] : memref<8x24x128xbf16, #tpu.memory_space<vmem>>, vector<1x8x128xbf16>
    %50 = vector.shape_cast %49 : vector<1x8x128xbf16> to vector<8x128xbf16>
    %51 = vector.shape_cast %48 : vector<8x128xbf16> to vector<1x8x128xbf16>
    tpu.vector_store %arg8[%c3_55, %c0_56, %c0_57], %51 {strides = array<i32>} : memref<8x24x128xbf16, #tpu.memory_space<vmem>>, vector<1x8x128xbf16>,
    %c3_58 = arith.constant 3 : index
    %c0_59 = arith.constant 0 : index
    %c0_60 = arith.constant 0 : index
    %52 = vector.load %arg5[%c3_58, %c0_59, %c0_60] : memref<8x8x128xbf16, #tpu.memory_space<vmem>>, vector<1x8x128xbf16>
    %53 = vector.shape_cast %52 : vector<1x8x128xbf16> to vector<8x128xbf16>
    %c3_61 = arith.constant 3 : index
    %c8_62 = arith.constant 8 : index
    %c0_63 = arith.constant 0 : index
    %54 = vector.load %arg8[%c3_61, %c8_62, %c0_63] : memref<8x24x128xbf16, #tpu.memory_space<vmem>>, vector<1x8x128xbf16>
    %55 = vector.shape_cast %54 : vector<1x8x128xbf16> to vector<8x128xbf16>
    %56 = vector.shape_cast %53 : vector<8x128xbf16> to vector<1x8x128xbf16>
    tpu.vector_store %arg8[%c3_61, %c8_62, %c0_63], %56 {strides = array<i32>} : memref<8x24x128xbf16, #tpu.memory_space<vmem>>, vector<1x8x128xbf16>,
    %c3_64 = arith.constant 3 : index
    %c0_65 = arith.constant 0 : index
    %c0_66 = arith.constant 0 : index
    %57 = vector.load %arg6[%c3_64, %c0_65, %c0_66] : memref<8x8x128xbf16, #tpu.memory_space<vmem>>, vector<1x8x128xbf16>
    %58 = vector.shape_cast %57 : vector<1x8x128xbf16> to vector<8x128xbf16>
    %c3_67 = arith.constant 3 : index
    %c16_68 = arith.constant 16 : index
    %c0_69 = arith.constant 0 : index
    %59 = vector.load %arg8[%c3_67, %c16_68, %c0_69] : memref<8x24x128xbf16, #tpu.memory_space<vmem>>, vector<1x8x128xbf16>
    %60 = vector.shape_cast %59 : vector<1x8x128xbf16> to vector<8x128xbf16>
    %61 = vector.shape_cast %58 : vector<8x128xbf16> to vector<1x8x128xbf16>
    tpu.vector_store %arg8[%c3_67, %c16_68, %c0_69], %61 {strides = array<i32>} : memref<8x24x128xbf16, #tpu.memory_space<vmem>>, vector<1x8x128xbf16>,
    %c4 = arith.constant 4 : index
    %c0_70 = arith.constant 0 : index
    %c0_71 = arith.constant 0 : index
    %62 = vector.load %arg4[%c4, %c0_70, %c0_71] : memref<8x8x128xbf16, #tpu.memory_space<vmem>>, vector<1x8x128xbf16>
    %63 = vector.shape_cast %62 : vector<1x8x128xbf16> to vector<8x128xbf16>
    %c4_72 = arith.constant 4 : index
    %c0_73 = arith.constant 0 : index
    %c0_74 = arith.constant 0 : index
    %64 = vector.load %arg8[%c4_72, %c0_73, %c0_74] : memref<8x24x128xbf16, #tpu.memory_space<vmem>>, vector<1x8x128xbf16>
    %65 = vector.shape_cast %64 : vector<1x8x128xbf16> to vector<8x128xbf16>
    %66 = vector.shape_cast %63 : vector<8x128xbf16> to vector<1x8x128xbf16>
    tpu.vector_store %arg8[%c4_72, %c0_73, %c0_74], %66 {strides = array<i32>} : memref<8x24x128xbf16, #tpu.memory_space<vmem>>, vector<1x8x128xbf16>,
    %c4_75 = arith.constant 4 : index
    %c0_76 = arith.constant 0 : index
    %c0_77 = arith.constant 0 : index
    %67 = vector.load %arg5[%c4_75, %c0_76, %c0_77] : memref<8x8x128xbf16, #tpu.memory_space<vmem>>, vector<1x8x128xbf16>
    %68 = vector.shape_cast %67 : vector<1x8x128xbf16> to vector<8x128xbf16>
    %c4_78 = arith.constant 4 : index
    %c8_79 = arith.constant 8 : index
    %c0_80 = arith.constant 0 : index
    %69 = vector.load %arg8[%c4_78, %c8_79, %c0_80] : memref<8x24x128xbf16, #tpu.memory_space<vmem>>, vector<1x8x128xbf16>
    %70 = vector.shape_cast %69 : vector<1x8x128xbf16> to vector<8x128xbf16>
    %71 = vector.shape_cast %68 : vector<8x128xbf16> to vector<1x8x128xbf16>
    tpu.vector_store %arg8[%c4_78, %c8_79, %c0_80], %71 {strides = array<i32>} : memref<8x24x128xbf16, #tpu.memory_space<vmem>>, vector<1x8x128xbf16>,
    %c4_81 = arith.constant 4 : index
    %c0_82 = arith.constant 0 : index
    %c0_83 = arith.constant 0 : index
    %72 = vector.load %arg6[%c4_81, %c0_82, %c0_83] : memref<8x8x128xbf16, #tpu.memory_space<vmem>>, vector<1x8x128xbf16>
    %73 = vector.shape_cast %72 : vector<1x8x128xbf16> to vector<8x128xbf16>
    %c4_84 = arith.constant 4 : index
    %c16_85 = arith.constant 16 : index
    %c0_86 = arith.constant 0 : index
    %74 = vector.load %arg8[%c4_84, %c16_85, %c0_86] : memref<8x24x128xbf16, #tpu.memory_space<vmem>>, vector<1x8x128xbf16>
    %75 = vector.shape_cast %74 : vector<1x8x128xbf16> to vector<8x128xbf16>
    %76 = vector.shape_cast %73 : vector<8x128xbf16> to vector<1x8x128xbf16>
    tpu.vector_store %arg8[%c4_84, %c16_85, %c0_86], %76 {strides = array<i32>} : memref<8x24x128xbf16, #tpu.memory_space<vmem>>, vector<1x8x128xbf16>,
    %c5 = arith.constant 5 : index
    %c0_87 = arith.constant 0 : index
    %c0_88 = arith.constant 0 : index
    %77 = vector.load %arg4[%c5, %c0_87, %c0_88] : memref<8x8x128xbf16, #tpu.memory_space<vmem>>, vector<1x8x128xbf16>
    %78 = vector.shape_cast %77 : vector<1x8x128xbf16> to vector<8x128xbf16>
    %c5_89 = arith.constant 5 : index
    %c0_90 = arith.constant 0 : index
    %c0_91 = arith.constant 0 : index
    %79 = vector.load %arg8[%c5_89, %c0_90, %c0_91] : memref<8x24x128xbf16, #tpu.memory_space<vmem>>, vector<1x8x128xbf16>
    %80 = vector.shape_cast %79 : vector<1x8x128xbf16> to vector<8x128xbf16>
    %81 = vector.shape_cast %78 : vector<8x128xbf16> to vector<1x8x128xbf16>
    tpu.vector_store %arg8[%c5_89, %c0_90, %c0_91], %81 {strides = array<i32>} : memref<8x24x128xbf16, #tpu.memory_space<vmem>>, vector<1x8x128xbf16>,
    %c5_92 = arith.constant 5 : index
    %c0_93 = arith.constant 0 : index
    %c0_94 = arith.constant 0 : index
    %82 = vector.load %arg5[%c5_92, %c0_93, %c0_94] : memref<8x8x128xbf16, #tpu.memory_space<vmem>>, vector<1x8x128xbf16>
    %83 = vector.shape_cast %82 : vector<1x8x128xbf16> to vector<8x128xbf16>
    %c5_95 = arith.constant 5 : index
    %c8_96 = arith.constant 8 : index
    %c0_97 = arith.constant 0 : index
    %84 = vector.load %arg8[%c5_95, %c8_96, %c0_97] : memref<8x24x128xbf16, #tpu.memory_space<vmem>>, vector<1x8x128xbf16>
    %85 = vector.shape_cast %84 : vector<1x8x128xbf16> to vector<8x128xbf16>
    %86 = vector.shape_cast %83 : vector<8x128xbf16> to vector<1x8x128xbf16>
    tpu.vector_store %arg8[%c5_95, %c8_96, %c0_97], %86 {strides = array<i32>} : memref<8x24x128xbf16, #tpu.memory_space<vmem>>, vector<1x8x128xbf16>,
    %c5_98 = arith.constant 5 : index
    %c0_99 = arith.constant 0 : index
    %c0_100 = arith.constant 0 : index
    %87 = vector.load %arg6[%c5_98, %c0_99, %c0_100] : memref<8x8x128xbf16, #tpu.memory_space<vmem>>, vector<1x8x128xbf16>
    %88 = vector.shape_cast %87 : vector<1x8x128xbf16> to vector<8x128xbf16>
    %c5_101 = arith.constant 5 : index
    %c16_102 = arith.constant 16 : index
    %c0_103 = arith.constant 0 : index
    %89 = vector.load %arg8[%c5_101, %c16_102, %c0_103] : memref<8x24x128xbf16, #tpu.memory_space<vmem>>, vector<1x8x128xbf16>
    %90 = vector.shape_cast %89 : vector<1x8x128xbf16> to vector<8x128xbf16>
    %91 = vector.shape_cast %88 : vector<8x128xbf16> to vector<1x8x128xbf16>
    tpu.vector_store %arg8[%c5_101, %c16_102, %c0_103], %91 {strides = array<i32>} : memref<8x24x128xbf16, #tpu.memory_space<vmem>>, vector<1x8x128xbf16>,
    %c6 = arith.constant 6 : index
    %c0_104 = arith.constant 0 : index
    %c0_105 = arith.constant 0 : index
    %92 = vector.load %arg4[%c6, %c0_104, %c0_105] : memref<8x8x128xbf16, #tpu.memory_space<vmem>>, vector<1x8x128xbf16>
    %93 = vector.shape_cast %92 : vector<1x8x128xbf16> to vector<8x128xbf16>
    %c6_106 = arith.constant 6 : index
    %c0_107 = arith.constant 0 : index
    %c0_108 = arith.constant 0 : index
    %94 = vector.load %arg8[%c6_106, %c0_107, %c0_108] : memref<8x24x128xbf16, #tpu.memory_space<vmem>>, vector<1x8x128xbf16>
    %95 = vector.shape_cast %94 : vector<1x8x128xbf16> to vector<8x128xbf16>
    %96 = vector.shape_cast %93 : vector<8x128xbf16> to vector<1x8x128xbf16>
    tpu.vector_store %arg8[%c6_106, %c0_107, %c0_108], %96 {strides = array<i32>} : memref<8x24x128xbf16, #tpu.memory_space<vmem>>, vector<1x8x128xbf16>,
    %c6_109 = arith.constant 6 : index
    %c0_110 = arith.constant 0 : index
    %c0_111 = arith.constant 0 : index
    %97 = vector.load %arg5[%c6_109, %c0_110, %c0_111] : memref<8x8x128xbf16, #tpu.memory_space<vmem>>, vector<1x8x128xbf16>
    %98 = vector.shape_cast %97 : vector<1x8x128xbf16> to vector<8x128xbf16>
    %c6_112 = arith.constant 6 : index
    %c8_113 = arith.constant 8 : index
    %c0_114 = arith.constant 0 : index
    %99 = vector.load %arg8[%c6_112, %c8_113, %c0_114] : memref<8x24x128xbf16, #tpu.memory_space<vmem>>, vector<1x8x128xbf16>
    %100 = vector.shape_cast %99 : vector<1x8x128xbf16> to vector<8x128xbf16>
    %101 = vector.shape_cast %98 : vector<8x128xbf16> to vector<1x8x128xbf16>
    tpu.vector_store %arg8[%c6_112, %c8_113, %c0_114], %101 {strides = array<i32>} : memref<8x24x128xbf16, #tpu.memory_space<vmem>>, vector<1x8x128xbf16>,
    %c6_115 = arith.constant 6 : index
    %c0_116 = arith.constant 0 : index
    %c0_117 = arith.constant 0 : index
    %102 = vector.load %arg6[%c6_115, %c0_116, %c0_117] : memref<8x8x128xbf16, #tpu.memory_space<vmem>>, vector<1x8x128xbf16>
    %103 = vector.shape_cast %102 : vector<1x8x128xbf16> to vector<8x128xbf16>
    %c6_118 = arith.constant 6 : index
    %c16_119 = arith.constant 16 : index
    %c0_120 = arith.constant 0 : index
    %104 = vector.load %arg8[%c6_118, %c16_119, %c0_120] : memref<8x24x128xbf16, #tpu.memory_space<vmem>>, vector<1x8x128xbf16>
    %105 = vector.shape_cast %104 : vector<1x8x128xbf16> to vector<8x128xbf16>
    %106 = vector.shape_cast %103 : vector<8x128xbf16> to vector<1x8x128xbf16>
    tpu.vector_store %arg8[%c6_118, %c16_119, %c0_120], %106 {strides = array<i32>} : memref<8x24x128xbf16, #tpu.memory_space<vmem>>, vector<1x8x128xbf16>,
    %c7 = arith.constant 7 : index
    %c0_121 = arith.constant 0 : index
    %c0_122 = arith.constant 0 : index
    %107 = vector.load %arg4[%c7, %c0_121, %c0_122] : memref<8x8x128xbf16, #tpu.memory_space<vmem>>, vector<1x8x128xbf16>
    %108 = vector.shape_cast %107 : vector<1x8x128xbf16> to vector<8x128xbf16>
    %c7_123 = arith.constant 7 : index
    %c0_124 = arith.constant 0 : index
    %c0_125 = arith.constant 0 : index
    %109 = vector.load %arg8[%c7_123, %c0_124, %c0_125] : memref<8x24x128xbf16, #tpu.memory_space<vmem>>, vector<1x8x128xbf16>
    %110 = vector.shape_cast %109 : vector<1x8x128xbf16> to vector<8x128xbf16>
    %111 = vector.shape_cast %108 : vector<8x128xbf16> to vector<1x8x128xbf16>
    tpu.vector_store %arg8[%c7_123, %c0_124, %c0_125], %111 {strides = array<i32>} : memref<8x24x128xbf16, #tpu.memory_space<vmem>>, vector<1x8x128xbf16>,
    %c7_126 = arith.constant 7 : index
    %c0_127 = arith.constant 0 : index
    %c0_128 = arith.constant 0 : index
    %112 = vector.load %arg5[%c7_126, %c0_127, %c0_128] : memref<8x8x128xbf16, #tpu.memory_space<vmem>>, vector<1x8x128xbf16>
    %113 = vector.shape_cast %112 : vector<1x8x128xbf16> to vector<8x128xbf16>
    %c7_129 = arith.constant 7 : index
    %c8_130 = arith.constant 8 : index
    %c0_131 = arith.constant 0 : index
    %114 = vector.load %arg8[%c7_129, %c8_130, %c0_131] : memref<8x24x128xbf16, #tpu.memory_space<vmem>>, vector<1x8x128xbf16>
    %115 = vector.shape_cast %114 : vector<1x8x128xbf16> to vector<8x128xbf16>
    %116 = vector.shape_cast %113 : vector<8x128xbf16> to vector<1x8x128xbf16>
    tpu.vector_store %arg8[%c7_129, %c8_130, %c0_131], %116 {strides = array<i32>} : memref<8x24x128xbf16, #tpu.memory_space<vmem>>, vector<1x8x128xbf16>,
    %c7_132 = arith.constant 7 : index
    %c0_133 = arith.constant 0 : index
    %c0_134 = arith.constant 0 : index
    %117 = vector.load %arg6[%c7_132, %c0_133, %c0_134] : memref<8x8x128xbf16, #tpu.memory_space<vmem>>, vector<1x8x128xbf16>
    %118 = vector.shape_cast %117 : vector<1x8x128xbf16> to vector<8x128xbf16>
    %c7_135 = arith.constant 7 : index
    %c16_136 = arith.constant 16 : index
    %c0_137 = arith.constant 0 : index
    %119 = vector.load %arg8[%c7_135, %c16_136, %c0_137] : memref<8x24x128xbf16, #tpu.memory_space<vmem>>, vector<1x8x128xbf16>
    %120 = vector.shape_cast %119 : vector<1x8x128xbf16> to vector<8x128xbf16>
    %121 = vector.shape_cast %118 : vector<8x128xbf16> to vector<1x8x128xbf16>
    tpu.vector_store %arg8[%c7_135, %c16_136, %c0_137], %121 {strides = array<i32>} : memref<8x24x128xbf16, #tpu.memory_space<vmem>>, vector<1x8x128xbf16>,
    %c0_138 = arith.constant 0 : index
    %c0_139 = arith.constant 0 : index
    %c0_140 = arith.constant 0 : index
    %122 = vector.load %arg8[%c0_138, %c0_139, %c0_140] : memref<8x24x128xbf16, #tpu.memory_space<vmem>>, vector<1x24x128xbf16>
    %123 = vector.shape_cast %122 : vector<1x24x128xbf16> to vector<24x128xbf16>
    %cst = arith.constant dense<0.000000e+00> : vector<8x128xf32>
    %124 = tpu.matmul %0, %123, %cst {dimension_numbers = #tpu.dot_dimension_numbers<[1], [0], [0], [1], [0, 0, 1, 1], [], []>} : vector<8x24xbf16>, vector<24x128xbf16>, vector<8x128xf32> -> vector<8x128xf32>
    %125 = vector.broadcast %1 : vector<8x1xf32> to vector<8x128xf32>
    %126 = arith.addf %124, %125 : vector<8x128xf32>
    %127 = arith.truncf %126 : vector<8x128xf32> to vector<8x128xbf16>
    %c0_141 = arith.constant 0 : index
    %c0_142 = arith.constant 0 : index
    %c0_143 = arith.constant 0 : index
    %128 = vector.load %arg7[%c0_141, %c0_142, %c0_143] : memref<8x8x128xbf16, #tpu.memory_space<vmem>>, vector<1x8x128xbf16>
    %129 = vector.shape_cast %128 : vector<1x8x128xbf16> to vector<8x128xbf16>
    %130 = vector.shape_cast %127 : vector<8x128xbf16> to vector<1x8x128xbf16>
    tpu.vector_store %arg7[%c0_141, %c0_142, %c0_143], %130 {strides = array<i32>} : memref<8x8x128xbf16, #tpu.memory_space<vmem>>, vector<1x8x128xbf16>,
    %c1_144 = arith.constant 1 : index
    %c0_145 = arith.constant 0 : index
    %c0_146 = arith.constant 0 : index
    %131 = vector.load %arg8[%c1_144, %c0_145, %c0_146] : memref<8x24x128xbf16, #tpu.memory_space<vmem>>, vector<1x24x128xbf16>
    %132 = vector.shape_cast %131 : vector<1x24x128xbf16> to vector<24x128xbf16>
    %cst_147 = arith.constant dense<0.000000e+00> : vector<8x128xf32>
    %133 = tpu.matmul %0, %132, %cst_147 {dimension_numbers = #tpu.dot_dimension_numbers<[1], [0], [0], [1], [0, 0, 1, 1], [], []>} : vector<8x24xbf16>, vector<24x128xbf16>, vector<8x128xf32> -> vector<8x128xf32>
    %134 = vector.broadcast %1 : vector<8x1xf32> to vector<8x128xf32>
    %135 = arith.addf %133, %134 : vector<8x128xf32>
    %136 = arith.truncf %135 : vector<8x128xf32> to vector<8x128xbf16>
    %c1_148 = arith.constant 1 : index
    %c0_149 = arith.constant 0 : index
    %c0_150 = arith.constant 0 : index
    %137 = vector.load %arg7[%c1_148, %c0_149, %c0_150] : memref<8x8x128xbf16, #tpu.memory_space<vmem>>, vector<1x8x128xbf16>
    %138 = vector.shape_cast %137 : vector<1x8x128xbf16> to vector<8x128xbf16>
    %139 = vector.shape_cast %136 : vector<8x128xbf16> to vector<1x8x128xbf16>
    tpu.vector_store %arg7[%c1_148, %c0_149, %c0_150], %139 {strides = array<i32>} : memref<8x8x128xbf16, #tpu.memory_space<vmem>>, vector<1x8x128xbf16>,
    %c2_151 = arith.constant 2 : index
    %c0_152 = arith.constant 0 : index
    %c0_153 = arith.constant 0 : index
    %140 = vector.load %arg8[%c2_151, %c0_152, %c0_153] : memref<8x24x128xbf16, #tpu.memory_space<vmem>>, vector<1x24x128xbf16>
    %141 = vector.shape_cast %140 : vector<1x24x128xbf16> to vector<24x128xbf16>
    %cst_154 = arith.constant dense<0.000000e+00> : vector<8x128xf32>
    %142 = tpu.matmul %0, %141, %cst_154 {dimension_numbers = #tpu.dot_dimension_numbers<[1], [0], [0], [1], [0, 0, 1, 1], [], []>} : vector<8x24xbf16>, vector<24x128xbf16>, vector<8x128xf32> -> vector<8x128xf32>
    %143 = vector.broadcast %1 : vector<8x1xf32> to vector<8x128xf32>
    %144 = arith.addf %142, %143 : vector<8x128xf32>
    %145 = arith.truncf %144 : vector<8x128xf32> to vector<8x128xbf16>
    %c2_155 = arith.constant 2 : index
    %c0_156 = arith.constant 0 : index
    %c0_157 = arith.constant 0 : index
    %146 = vector.load %arg7[%c2_155, %c0_156, %c0_157] : memref<8x8x128xbf16, #tpu.memory_space<vmem>>, vector<1x8x128xbf16>
    %147 = vector.shape_cast %146 : vector<1x8x128xbf16> to vector<8x128xbf16>
    %148 = vector.shape_cast %145 : vector<8x128xbf16> to vector<1x8x128xbf16>
    tpu.vector_store %arg7[%c2_155, %c0_156, %c0_157], %148 {strides = array<i32>} : memref<8x8x128xbf16, #tpu.memory_space<vmem>>, vector<1x8x128xbf16>,
    %c3_158 = arith.constant 3 : index
    %c0_159 = arith.constant 0 : index
    %c0_160 = arith.constant 0 : index
    %149 = vector.load %arg8[%c3_158, %c0_159, %c0_160] : memref<8x24x128xbf16, #tpu.memory_space<vmem>>, vector<1x24x128xbf16>
    %150 = vector.shape_cast %149 : vector<1x24x128xbf16> to vector<24x128xbf16>
    %cst_161 = arith.constant dense<0.000000e+00> : vector<8x128xf32>
    %151 = tpu.matmul %0, %150, %cst_161 {dimension_numbers = #tpu.dot_dimension_numbers<[1], [0], [0], [1], [0, 0, 1, 1], [], []>} : vector<8x24xbf16>, vector<24x128xbf16>, vector<8x128xf32> -> vector<8x128xf32>
    %152 = vector.broadcast %1 : vector<8x1xf32> to vector<8x128xf32>
    %153 = arith.addf %151, %152 : vector<8x128xf32>
    %154 = arith.truncf %153 : vector<8x128xf32> to vector<8x128xbf16>
    %c3_162 = arith.constant 3 : index
    %c0_163 = arith.constant 0 : index
    %c0_164 = arith.constant 0 : index
    %155 = vector.load %arg7[%c3_162, %c0_163, %c0_164] : memref<8x8x128xbf16, #tpu.memory_space<vmem>>, vector<1x8x128xbf16>
    %156 = vector.shape_cast %155 : vector<1x8x128xbf16> to vector<8x128xbf16>
    %157 = vector.shape_cast %154 : vector<8x128xbf16> to vector<1x8x128xbf16>
    tpu.vector_store %arg7[%c3_162, %c0_163, %c0_164], %157 {strides = array<i32>} : memref<8x8x128xbf16, #tpu.memory_space<vmem>>, vector<1x8x128xbf16>,
    %c4_165 = arith.constant 4 : index
    %c0_166 = arith.constant 0 : index
    %c0_167 = arith.constant 0 : index
    %158 = vector.load %arg8[%c4_165, %c0_166, %c0_167] : memref<8x24x128xbf16, #tpu.memory_space<vmem>>, vector<1x24x128xbf16>
    %159 = vector.shape_cast %158 : vector<1x24x128xbf16> to vector<24x128xbf16>
    %cst_168 = arith.constant dense<0.000000e+00> : vector<8x128xf32>
    %160 = tpu.matmul %0, %159, %cst_168 {dimension_numbers = #tpu.dot_dimension_numbers<[1], [0], [0], [1], [0, 0, 1, 1], [], []>} : vector<8x24xbf16>, vector<24x128xbf16>, vector<8x128xf32> -> vector<8x128xf32>
    %161 = vector.broadcast %1 : vector<8x1xf32> to vector<8x128xf32>
    %162 = arith.addf %160, %161 : vector<8x128xf32>
    %163 = arith.truncf %162 : vector<8x128xf32> to vector<8x128xbf16>
    %c4_169 = arith.constant 4 : index
    %c0_170 = arith.constant 0 : index
    %c0_171 = arith.constant 0 : index
    %164 = vector.load %arg7[%c4_169, %c0_170, %c0_171] : memref<8x8x128xbf16, #tpu.memory_space<vmem>>, vector<1x8x128xbf16>
    %165 = vector.shape_cast %164 : vector<1x8x128xbf16> to vector<8x128xbf16>
    %166 = vector.shape_cast %163 : vector<8x128xbf16> to vector<1x8x128xbf16>
    tpu.vector_store %arg7[%c4_169, %c0_170, %c0_171], %166 {strides = array<i32>} : memref<8x8x128xbf16, #tpu.memory_space<vmem>>, vector<1x8x128xbf16>,
    %c5_172 = arith.constant 5 : index
    %c0_173 = arith.constant 0 : index
    %c0_174 = arith.constant 0 : index
    %167 = vector.load %arg8[%c5_172, %c0_173, %c0_174] : memref<8x24x128xbf16, #tpu.memory_space<vmem>>, vector<1x24x128xbf16>
    %168 = vector.shape_cast %167 : vector<1x24x128xbf16> to vector<24x128xbf16>
    %cst_175 = arith.constant dense<0.000000e+00> : vector<8x128xf32>
    %169 = tpu.matmul %0, %168, %cst_175 {dimension_numbers = #tpu.dot_dimension_numbers<[1], [0], [0], [1], [0, 0, 1, 1], [], []>} : vector<8x24xbf16>, vector<24x128xbf16>, vector<8x128xf32> -> vector<8x128xf32>
    %170 = vector.broadcast %1 : vector<8x1xf32> to vector<8x128xf32>
    %171 = arith.addf %169, %170 : vector<8x128xf32>
    %172 = arith.truncf %171 : vector<8x128xf32> to vector<8x128xbf16>
    %c5_176 = arith.constant 5 : index
    %c0_177 = arith.constant 0 : index
    %c0_178 = arith.constant 0 : index
    %173 = vector.load %arg7[%c5_176, %c0_177, %c0_178] : memref<8x8x128xbf16, #tpu.memory_space<vmem>>, vector<1x8x128xbf16>
    %174 = vector.shape_cast %173 : vector<1x8x128xbf16> to vector<8x128xbf16>
    %175 = vector.shape_cast %172 : vector<8x128xbf16> to vector<1x8x128xbf16>
    tpu.vector_store %arg7[%c5_176, %c0_177, %c0_178], %175 {strides = array<i32>} : memref<8x8x128xbf16, #tpu.memory_space<vmem>>, vector<1x8x128xbf16>,
    %c6_179 = arith.constant 6 : index
    %c0_180 = arith.constant 0 : index
    %c0_181 = arith.constant 0 : index
    %176 = vector.load %arg8[%c6_179, %c0_180, %c0_181] : memref<8x24x128xbf16, #tpu.memory_space<vmem>>, vector<1x24x128xbf16>
    %177 = vector.shape_cast %176 : vector<1x24x128xbf16> to vector<24x128xbf16>
    %cst_182 = arith.constant dense<0.000000e+00> : vector<8x128xf32>
    %178 = tpu.matmul %0, %177, %cst_182 {dimension_numbers = #tpu.dot_dimension_numbers<[1], [0], [0], [1], [0, 0, 1, 1], [], []>} : vector<8x24xbf16>, vector<24x128xbf16>, vector<8x128xf32> -> vector<8x128xf32>
    %179 = vector.broadcast %1 : vector<8x1xf32> to vector<8x128xf32>
    %180 = arith.addf %178, %179 : vector<8x128xf32>
    %181 = arith.truncf %180 : vector<8x128xf32> to vector<8x128xbf16>
    %c6_183 = arith.constant 6 : index
    %c0_184 = arith.constant 0 : index
    %c0_185 = arith.constant 0 : index
    %182 = vector.load %arg7[%c6_183, %c0_184, %c0_185] : memref<8x8x128xbf16, #tpu.memory_space<vmem>>, vector<1x8x128xbf16>
    %183 = vector.shape_cast %182 : vector<1x8x128xbf16> to vector<8x128xbf16>
    %184 = vector.shape_cast %181 : vector<8x128xbf16> to vector<1x8x128xbf16>
    tpu.vector_store %arg7[%c6_183, %c0_184, %c0_185], %184 {strides = array<i32>} : memref<8x8x128xbf16, #tpu.memory_space<vmem>>, vector<1x8x128xbf16>,
    %c7_186 = arith.constant 7 : index
    %c0_187 = arith.constant 0 : index
    %c0_188 = arith.constant 0 : index
    %185 = vector.load %arg8[%c7_186, %c0_187, %c0_188] : memref<8x24x128xbf16, #tpu.memory_space<vmem>>, vector<1x24x128xbf16>
    %186 = vector.shape_cast %185 : vector<1x24x128xbf16> to vector<24x128xbf16>
    %cst_189 = arith.constant dense<0.000000e+00> : vector<8x128xf32>
    %187 = tpu.matmul %0, %186, %cst_189 {dimension_numbers = #tpu.dot_dimension_numbers<[1], [0], [0], [1], [0, 0, 1, 1], [], []>} : vector<8x24xbf16>, vector<24x128xbf16>, vector<8x128xf32> -> vector<8x128xf32>
    %188 = vector.broadcast %1 : vector<8x1xf32> to vector<8x128xf32>
    %189 = arith.addf %187, %188 : vector<8x128xf32>
    %190 = arith.truncf %189 : vector<8x128xf32> to vector<8x128xbf16>
    %c7_190 = arith.constant 7 : index
    %c0_191 = arith.constant 0 : index
    %c0_192 = arith.constant 0 : index
    %191 = vector.load %arg7[%c7_190, %c0_191, %c0_192] : memref<8x8x128xbf16, #tpu.memory_space<vmem>>, vector<1x8x128xbf16>
    %192 = vector.shape_cast %191 : vector<1x8x128xbf16> to vector<8x128xbf16>
    %193 = vector.shape_cast %190 : vector<8x128xbf16> to vector<1x8x128xbf16>
    tpu.vector_store %arg7[%c7_190, %c0_191, %c0_192], %193 {strides = array<i32>} : memref<8x8x128xbf16, #tpu.memory_space<vmem>>, vector<1x8x128xbf16>,
    return
  }
  func.func @transform_0(%arg0: i32, %arg1: i32) -> (i32, i32) {
    %c0_i32 = arith.constant 0 : i32
    %c0_i32_0 = arith.constant 0 : i32
    %c0_i32_1 = arith.constant 0 : i32
    return %c0_i32, %c0_i32_0 : i32, i32
  }
  func.func @transform_1(%arg0: i32, %arg1: i32) -> (i32, i32) {
    %c0_i32 = arith.constant 0 : i32
    %c0_i32_0 = arith.constant 0 : i32
    %c0_i32_1 = arith.constant 0 : i32
    return %c0_i32, %c0_i32_0 : i32, i32
  }
  func.func @transform_2(%arg0: i32, %arg1: i32) -> (i32, i32, i32) {
    %c0_i32 = arith.constant 0 : i32
    %c0_i32_0 = arith.constant 0 : i32
    return %arg0, %c0_i32, %arg1 : i32, i32, i32
  }
  func.func @transform_3(%arg0: i32, %arg1: i32) -> (i32, i32, i32) {
    %c0_i32 = arith.constant 0 : i32
    %c0_i32_0 = arith.constant 0 : i32
    return %arg0, %c0_i32, %arg1 : i32, i32, i32
  }
  func.func @transform_4(%arg0: i32, %arg1: i32) -> (i32, i32, i32) {
    %c0_i32 = arith.constant 0 : i32
    %c0_i32_0 = arith.constant 0 : i32
    return %arg0, %c0_i32, %arg1 : i32, i32, i32
  }
  func.func @transform_5(%arg0: i32, %arg1: i32) -> (i32, i32, i32) {
    %c0_i32 = arith.constant 0 : i32
    %c0_i32_0 = arith.constant 0 : i32
    return %arg0, %c0_i32, %arg1 : i32, i32, i32
  }
}

</mosaic_0001>

<bundles_post_ra>
// kernel: gcn_forward.2
= control target key start
LH: loop header
LB: loop body
LE: loop exit
PB: predicated region body
PF: predicated region fallthrough
CT: control target
= control target key end

     0   :  { %s739_s12 = smov 0   ;;  %s741_s13 = smov 0   ;;  %s827_s0 = inlined_call_operand.vmem [shape: bf16[16,16], index: 0, kind: input, shape index: {}]   ;;  %s828_s1 = inlined_call_operand.vmem [shape: bf16[16,1024], index: 1, kind: input, shape index: {}]   ;;  %s829_s2 = inlined_call_operand.vmem [shape: bf16[16,1024], index: 2, kind: output, shape index: {0}]   ;;  %s830_s3 = inlined_call_operand.vmem [shape: bf16[16,1024], index: 3, kind: output, shape index: {1}]  }
   0x1   :  { %s743_s14 = smov 0  }
   0x2 LB: > { %s755_s15 = sadd.s32 4294967295, %s716_s14   ;;  %s758_s16 = sadd.s32 1, %s716_s14   ;;  %s716_s14 = sphi %s743_s14, %s834_s14   ;;  %s712_s13 = sphi %s741_s13, %s833_s13   ;;  %s708_s12 = sphi %s739_s12, %s832_s12  }
   0x3   : > { %s39_s17 = ssub.s32 %s716_s14, %s758_s16  ;;  %s42_s18 = sadd.s32 1, %s712_s13 }
   0x4   : > { %p40_p0 = scmp.eq.s32.totalorder %s39_s17, 0  ;;  %p49_p1 = scmp.ne.s32.totalorder %s712_s13, %s708_s12 }
   0x5   : > { %p50_p2 = scmp.eq.s32.totalorder %s716_s14, 0  ;;  %p79_p3 = scmp.eq.s32.totalorder %s755_s15, 1 }
   0x6   : > { %s768_s19 = scalar_select %p40_p0, %s712_s13, %s42_s18  }
   0x7   : > { %p51_p4 = por %p50_p2, %p49_p1  ;;  %p770_p5 = por %p79_p3, %p49_p1 }
   0x8   : > { %p618_p6 = scmp.ge.s32.totalorder %s716_s14, 2 }
   0xa   : > { %130 = sbr.rel (%p618_p6) target bundleno = 24 (0x18), region = 20 }
  0x11   : > { %133 = sbr.rel (!%p51_p4) target bundleno = 24 (0x18), region = 24  ;;  %s135_s21 = sand.u32 (%p51_p4), 1, %s712_s13  }
  0x12   : > { %s651_s22 = sshll.u32 (%p51_p4), %s716_s14, 4  ;;  %s619_s23 = sshll.u32 (%p51_p4), %s135_s21, 5 }
  0x13   : > { %s140_s26 = scalar_lea.vmem (%p51_p4), %s828_s1, %s651_s22  ;;  %s137_s27 = scalar_lea.vmem (%p51_p4), [#allocation2], %s619_s23 }
  0x14   : > { %v153_v0 = vld [vmem:[%s140_s26] sm:$0xff] (%p51_p4)  ;;  %v155_v1 = vld [vmem:[%s140_s26 + $0x8] sm:$0xff] (%p51_p4) }
  0x15   : > { %v157_v2 = vld [vmem:[%s140_s26 + $0x20] sm:$0xff] (%p51_p4)  ;;  %154 = vst [vmem:[%s137_s27] sm:$0xff] (%p51_p4), %v153_v0  ;;  %156 = vst [vmem:[%s137_s27 + $0x8] sm:$0xff] (%p51_p4), %v155_v1  ;;  %v159_v3 = vld [vmem:[%s140_s26 + $0x28] sm:$0xff] (%p51_p4) }
  0x16   : > { %158 = vst [vmem:[%s137_s27 + $0x10] sm:$0xff] (%p51_p4), %v157_v2  ;;  %160 = vst [vmem:[%s137_s27 + $0x18] sm:$0xff] (%p51_p4), %v159_v3 }
  0x18 PF: > { %p622_p7 = scmp.ge.s32.totalorder %s716_s14, 1  ;;  %p165_p8 = scmp.lt.s32.totalorder %s716_s14, 3 }
  0x1a   : > { %p166_p9 = pnand %p622_p7, %p165_p8 }
  0x1b   : > { %s172_s28 = sand.u32 (!%p166_p9), 1, %s708_s12   ;;  %v718_v4 = vmov (!%p166_p9), 0   ;;  %v693_v9 = vld [vmem:[%s827_s0] sm:$0xff] (!%p166_p9)   ;;  %vm233_vm0 = vcmask (!%p166_p9), 130048  }
  0x1c   : > { %169 = sbr.rel (%p166_p9) target bundleno = 482 (0x1e2), region = 47  ;;  %s783_s29 = sshll.u32 (!%p166_p9), %s172_s28, 5  ;;  %269 = vmatprep.mubr.bf16.mxu0 (!%p166_p9), %v718_v4  ;;  %312 = vmatprep.mubr.bf16.mxu1 (!%p166_p9), %v718_v4 }
  0x1d   : > { %s174_s30 = scalar_lea.vmem (!%p166_p9), [#allocation2], %s783_s29  ;;  %s792_s6 = scalar_lea.vmem (!%p166_p9), [#allocation3], %s783_s29 }
  0x1e   : > { %v687_v5 = vld [vmem:[%s174_s30 + $0x4] ss:$16 sps:$4 sm:$0xff] (!%p166_p9)   ;;  %v689_v6 = vld [vmem:[%s174_s30 + $0xc] ss:$16 sps:$4 sm:$0xff] (!%p166_p9)   ;;  %v691_v7 = vld [vmem:[%s174_s30] ss:$16 sps:$4 sm:$0xff] (!%p166_p9)  }
  0x1f   : > { %237 = vmatprep.subr.bf16.mxu0 (!%p166_p9), %v687_v5  ;;  %v692_v8 = vld [vmem:[%s174_s30 + $0x8] ss:$16 sps:$4 sm:$0xff] (!%p166_p9)   ;;  %280 = vmatprep.subr.bf16.mxu1 (!%p166_p9), %v689_v6  ;;  %s197_s7 = scalar_lea.vmem (!%p166_p9), [#allocation4], %s783_s29 }
  0x20   : > { %238 = vmatpush1.bf16.msra.mxu0 (!%p166_p9), %v691_v7  ;;  %281 = vmatpush1.bf16.msra.mxu1 (!%p166_p9), %v692_v8 }
  0x23   : > { %631 = vmatmul.mubr.msk.bf16.vlgmr.msra.gmra.mrb[0].mxu0 %vm233_vm0, %v693_v9  ;;  %632 = vmatmul.mubr.msk.bf16.vlgmr.msra.gmra.mrb[0].mxu1 %vm233_vm0, %v693_v9  ;;  %s660_s8 = sshll.u32 (%p770_p5), %s755_s15, 4 }
  0x24   : > { %383 = vmatprep.mubr.bf16.mxu0 %v718_v4  ;;  %426 = vmatprep.mubr.bf16.mxu1 %v718_v4  ;;  %s478_s11 = scalar_lea.vmem (%p770_p5), %s829_s2, %s660_s8 }
  0xf6   : > { %v271_v10 = vpop.f32.mrb[0].mxu0  ;;  %v314_v11 = vpop.f32.mrb[0].mxu1 }
  0xf7   : > { %v273_v12 = vpop.f32.mrb[1].mxu0  ;;  %v316_v13 = vpop.f32.mrb[1].mxu1 }
  0xf8   : > { %v652_v14 = vpack.c.bf16 %v273_v12, %v271_v10  ;;  %v653_v15 = vpack.c.bf16 %v316_v13, %v314_v11  ;;  %v275_v16 = vpop.f32.mrb[2].mxu0  ;;  %v318_v17 = vpop.f32.mrb[2].mxu1 }
  0xf9   : > { %v323_v18 = vpack.c.bf16 %v275_v16, %v271_v10  ;;  %v325_v19 = vpack.c.bf16 %v318_v17, %v314_v11  ;;  %v277_v20 = vpop.f32.mrb[3].mxu0  ;;  %v320_v21 = vpop.f32.mrb[3].mxu1 }
  0xfa   : > { %347 = vst [vmem:[%s792_s6] sm:$0xff] %v652_v14  ;;  %348 = vst [vmem:[%s792_s6 + $0x8] sm:$0xff] %v653_v15  ;;  %v324_v22 = vpack.c.bf16 %v277_v20, %v273_v12  ;;  %v654_v23 = vpack.c.bf16 %v277_v20, %v275_v16  ;;  %v326_v24 = vpack.c.bf16 %v320_v21, %v316_v13 }
  0xfb   : > { %v655_v25 = vpack.c.bf16 %v320_v21, %v318_v17 }
  0xfc   : > { %349 = vst [vmem:[%s792_s6 + $0x10] sm:$0xff] %v654_v23  ;;  %351 = vmatprep.subr.bf16.mxu0 %v324_v22  ;;  %394 = vmatprep.subr.bf16.mxu1 %v326_v24 }
  0xfd   : > { %350 = vst [vmem:[%s792_s6 + $0x18] sm:$0xff] %v655_v25  ;;  %352 = vmatpush1.bf16.msra.mxu0 %v323_v18  ;;  %395 = vmatpush1.bf16.msra.mxu1 %v325_v19 }
 0x100   : > { %637 = vmatmul.mubr.msk.bf16.vlgmr.msra.gmra.mrb[4].mxu0 %vm233_vm0, %v693_v9  ;;  %638 = vmatmul.mubr.msk.bf16.vlgmr.msra.gmra.mrb[4].mxu1 %vm233_vm0, %v693_v9 }
 0x101   : > { %v491_v38 = vld [vmem:[%s792_s6] sm:$0xff] (%p770_p5)  ;;  %v493_v39 = vld [vmem:[%s792_s6 + $0x8] sm:$0xff] (%p770_p5) }
 0x102   : > { %492 = vst [vmem:[%s478_s11] sm:$0xff] (%p770_p5), %v491_v38  ;;  %494 = vst [vmem:[%s478_s11 + $0x8] sm:$0xff] (%p770_p5), %v493_v39 }
 0x103   : > { %v495_v40 = vld [vmem:[%s792_s6 + $0x10] sm:$0xff] (%p770_p5) }
 0x104   : > { %v497_v41 = vld [vmem:[%s792_s6 + $0x18] sm:$0xff] (%p770_p5)  ;;  %496 = vst [vmem:[%s478_s11 + $0x20] sm:$0xff] (%p770_p5), %v495_v40 }
 0x105   : > { %498 = vst [vmem:[%s478_s11 + $0x28] sm:$0xff] (%p770_p5), %v497_v41 }
 0x1d3   : > { %v385_v26 = vpop.f32.mrb[4].mxu0  ;;  %v428_v27 = vpop.f32.mrb[4].mxu1  ;;  %475 = sbr.rel (!%p770_p5) target bundleno = 474 (0x1da), region = 55 }
 0x1d4   : > { %v387_v28 = vpop.f32.mrb[5].mxu0  ;;  %v430_v29 = vpop.f32.mrb[5].mxu1 }
 0x1d5   : > { %v656_v30 = vpack.c.bf16 %v387_v28, %v385_v26  ;;  %v657_v31 = vpack.c.bf16 %v430_v29, %v428_v27  ;;  %v389_v32 = vpop.f32.mrb[6].mxu0  ;;  %v432_v33 = vpop.f32.mrb[6].mxu1 }
 0x1d6   : > { %v391_v34 = vpop.f32.mrb[7].mxu0  ;;  %v434_v35 = vpop.f32.mrb[7].mxu1 }
 0x1d7   : > { %461 = vst [vmem:[%s197_s7] sm:$0xff] %v656_v30  ;;  %462 = vst [vmem:[%s197_s7 + $0x8] sm:$0xff] %v657_v31  ;;  %v658_v36 = vpack.c.bf16 %v391_v34, %v389_v32  ;;  %v659_v37 = vpack.c.bf16 %v434_v35, %v432_v33 }
 0x1d9   : > { %463 = vst [vmem:[%s197_s7 + $0x10] sm:$0xff] %v658_v36  ;;  %464 = vst [vmem:[%s197_s7 + $0x18] sm:$0xff] %v659_v37 }
 0x1da PF: > { %504 = sbr.rel (!%p770_p5) target bundleno = 482 (0x1e2), region = 78  ;;  %s661_s12 = sshll.u32 (%p770_p5), %s755_s15, 4 }
 0x1db   : > { %s507_s18 = scalar_lea.vmem (%p770_p5), %s830_s3, %s661_s12 }
 0x1de   : > { %v520_v42 = vld [vmem:[%s197_s7] sm:$0xff] (%p770_p5)  ;;  %v522_v43 = vld [vmem:[%s197_s7 + $0x8] sm:$0xff] (%p770_p5) }
 0x1df   : > { %521 = vst [vmem:[%s507_s18] sm:$0xff] (%p770_p5), %v520_v42  ;;  %523 = vst [vmem:[%s507_s18 + $0x8] sm:$0xff] (%p770_p5), %v522_v43 }
 0x1e0   : > { %v524_v44 = vld [vmem:[%s197_s7 + $0x10] sm:$0xff] (%p770_p5)  ;;  %v526_v45 = vld [vmem:[%s197_s7 + $0x18] sm:$0xff] (%p770_p5) }
 0x1e1   : > { %525 = vst [vmem:[%s507_s18 + $0x20] sm:$0xff] %v524_v44  ;;  %527 = vst [vmem:[%s507_s18 + $0x28] sm:$0xff] %v526_v45 }
 0x1e2 PF: > { %p11_p10 = scmp.ge.s32.totalorder %s758_s16, 4   ;;  %s832_s12 = smov %s712_s13 }
 0x1e3   : > { %s833_s13 = smov %s768_s19  ;;  %s834_s14 = smov %s758_s16 }
 0x1e4   :  { %13 = sbr.rel (!%p11_p10) target bundleno = 2 (0x2), region = 144 }

// kernel: gcn_forward.3
= control target key start
LH: loop header
LB: loop body
LE: loop exit
PB: predicated region body
PF: predicated region fallthrough
CT: control target
= control target key end

     0   :  { %s1241_s18 = smov 0   ;;  %s1243_s19 = smov 0   ;;  %s1380_s0 = inlined_call_operand.vmem [shape: bf16[8,24], index: 0, kind: input, shape index: {}]   ;;  %s1381_s1 = inlined_call_operand.vmem [shape: f32[8,1], index: 1, kind: input, shape index: {}]   ;;  %s1382_s2 = inlined_call_operand.vmem [shape: bf16[16,8,128], index: 2, kind: input, shape index: {}]   ;;  %s1383_s3 = inlined_call_operand.vmem [shape: bf16[16,8,128], index: 3, kind: input, shape index: {}]   ;;  %s1384_s4 = inlined_call_operand.vmem [shape: bf16[16,8,128], index: 4, kind: input, shape index: {}]   ;;  %s1385_s5 = inlined_call_operand.vmem [shape: bf16[16,8,128], index: 5, kind: output, shape index: {}]  }
   0x1   :  { %s1245_s20 = smov 0  }
   0x2 LB: > { %s27_s21 = sadd.s32 1, %s1202_s19  ;;  %p989_p0 = scmp.ge.s32.totalorder %s1206_s20, 1  ;;  %s1206_s20 = sphi %s1245_s20, %s15_s20   ;;  %s1202_s19 = sphi %s1243_s19, %s1387_s19   ;;  %s1198_s18 = sphi %s1241_s18, %s1386_s18  }
   0x3   : > { %p29_p1 = scmp.ge.s32.totalorder %s27_s21, 2  ;;  %p239_p2 = scmp.lt.s32.totalorder %s1206_s20, 3 }
   0x5   : > { %s1389_s21 = smov (%p29_p1, %s27_s21), 0  ;;  %p240_p3 = pnand %p989_p0, %p239_p2 }
   0x6   : > { %s990_s22 = sshll.u32 (!%p240_p3), %s1198_s18, 3  ;;  %v1208_v0 = vmov (!%p240_p3), 0.0   ;;  %v327_v1 = vld [vmem:[%s1381_s1] sm:$0xff] (!%p240_p3)  ;;  %vm1209_vm0 = vmmov (!%p240_p3), 0   ;;  %v1210_v2 = vmov (!%p240_p3), 0   ;;  %vm425_vm1 = vcmask (!%p240_p3), 1043456  }
   0x7   : > { %243 = sbr.rel (%p240_p3) target bundleno = 281 (0x119), region = 40  ;;  %1076 = vmatprep.subr.bf16.mxu0 (!%p240_p3), %v1208_v0  ;;  %1084 = vmatprep.subr.bf16.mxu1 (!%p240_p3), %v1208_v0  ;;  %p290_p4 = scmp.lt.s32.totalorder (!%p240_p3), %s990_s22, 15  ;;  %v326_v33 = vld [vmem:[%s1380_s0] sm:$0xf] (!%p240_p3)  ;;  %vm421_vm2 = vcmask (!%p240_p3), 195584  }
   0x8   : > { %1080 = vmatprep.mubr.msk.bf16.mxu0 (!%p240_p3), %vm1209_vm0, %v1208_v0  ;;  %1088 = vmatprep.mubr.msk.bf16.mxu1 (!%p240_p3), %vm1209_vm0, %v1208_v0 }
   0x9   : > { %1167 = vset.pattern.permute.xlu0 (!%p240_p3), %v1210_v2 }
   0xa   : > { %409 = vperm.xlu0 (!%p240_p3), %1167, %v327_v1  }
   0xe   : > { %s1391_s22 = smov (!%p290_p4, %s990_s22), 15 }
   0xf   : > { %s1268_s25 = sshll.u32 %s1391_s22, 2 }
  0x10   : > { %s1274_s28 = scalar_lea.vmem %s1382_s2, %s1268_s25  ;;  %s1280_s6 = scalar_lea.vmem %s1383_s3, %s1268_s25 }
  0x11   : > { %v328_v3 = vld [vmem:[%s1274_s28] sm:$0xf]  ;;  %v998_v5 = vld [vmem:[%s1274_s28 + $0x4] sm:$0xf]  ;;  %s1289_s9 = scalar_lea.vmem %s1384_s4, %s1268_s25  ;;  %v1001_v9 = vld [vmem:[%s1274_s28 + $0x8] sm:$0xf]  ;;  %s1361_s14 = scalar_lea.vmem %s1385_s5, %s1268_s25 }
  0x12   : > { %v330_v4 = vld [vmem:[%s1280_s6] sm:$0xf]  ;;  %329 = vst [vmem:[#allocation2] sm:$0xf] %v328_v3  ;;  %337 = vst [vmem:[#allocation2 + $0xc] sm:$0xf] %v998_v5 }
  0x13   : > { %331 = vst [vmem:[#allocation2 + $0x4] sm:$0xf] %v330_v4  ;;  %v999_v6 = vld [vmem:[%s1280_s6 + $0x4] sm:$0xf]  ;;  %v332_v7 = vld [vmem:[%s1289_s9] sm:$0xf] }
  0x14   : > { %v1000_v8 = vld [vmem:[%s1289_s9 + $0x4] sm:$0xf]  ;;  %340 = vst [vmem:[#allocation2 + $0x10] sm:$0xf] %v999_v6  ;;  %333 = vst [vmem:[#allocation2 + $0x8] sm:$0xf] %v332_v7 }
  0x15   : > { %343 = vst [vmem:[#allocation2 + $0x14] sm:$0xf] %v1000_v8  ;;  %v1002_v10 = vld [vmem:[%s1280_s6 + $0x8] sm:$0xf]  ;;  %v1004_v11 = vld [vmem:[%s1274_s28 + $0xc] sm:$0xf] }
  0x16   : > { %347 = vst [vmem:[#allocation2 + $0x18] sm:$0xf] %v1001_v9  ;;  %350 = vst [vmem:[#allocation2 + $0x1c] sm:$0xf] %v1002_v10  ;;  %v1005_v12 = vld [vmem:[%s1280_s6 + $0xc] sm:$0xf] }
  0x17   : > { %357 = vst [vmem:[#allocation2 + $0x24] sm:$0xf] %v1004_v11  ;;  %v1003_v13 = vld [vmem:[%s1289_s9 + $0x8] sm:$0xf]  ;;  %v1006_v14 = vld [vmem:[%s1289_s9 + $0xc] sm:$0xf] }
  0x18   : > { %360 = vst [vmem:[#allocation2 + $0x28] sm:$0xf] %v1005_v12  ;;  %353 = vst [vmem:[#allocation2 + $0x20] sm:$0xf] %v1003_v13  ;;  %v1007_v15 = vld [vmem:[%s1274_s28 + $0x10] sm:$0xf] }
  0x19   : > { %363 = vst [vmem:[#allocation2 + $0x2c] sm:$0xf] %v1006_v14  ;;  %v1008_v16 = vld [vmem:[%s1280_s6 + $0x10] sm:$0xf]  ;;  %v1010_v17 = vld [vmem:[%s1274_s28 + $0x14] sm:$0xf] }
  0x1a   : > { %367 = vst [vmem:[#allocation2 + $0x30] sm:$0xf] %v1007_v15  ;;  %370 = vst [vmem:[#allocation2 + $0x34] sm:$0xf] %v1008_v16  ;;  %v1011_v18 = vld [vmem:[%s1280_s6 + $0x14] sm:$0xf] }
  0x1b   : > { %377 = vst [vmem:[#allocation2 + $0x3c] sm:$0xf] %v1010_v17  ;;  %v1009_v19 = vld [vmem:[%s1289_s9 + $0x10] sm:$0xf]  ;;  %v1012_v20 = vld [vmem:[%s1289_s9 + $0x14] sm:$0xf] }
  0x1c   : > { %380 = vst [vmem:[#allocation2 + $0x40] sm:$0xf] %v1011_v18  ;;  %373 = vst [vmem:[#allocation2 + $0x38] sm:$0xf] %v1009_v19  ;;  %v1013_v21 = vld [vmem:[%s1274_s28 + $0x18] sm:$0xf] }
  0x1d   : > { %383 = vst [vmem:[#allocation2 + $0x44] sm:$0xf] %v1012_v20  ;;  %v1014_v22 = vld [vmem:[%s1280_s6 + $0x18] sm:$0xf]  ;;  %v1016_v23 = vld [vmem:[%s1274_s28 + $0x1c] sm:$0xf] }
  0x1e   : > { %387 = vst [vmem:[#allocation2 + $0x48] sm:$0xf] %v1013_v21  ;;  %390 = vst [vmem:[#allocation2 + $0x4c] sm:$0xf] %v1014_v22  ;;  %v1017_v24 = vld [vmem:[%s1280_s6 + $0x1c] sm:$0xf] }
  0x1f   : > { %397 = vst [vmem:[#allocation2 + $0x54] sm:$0xf] %v1016_v23  ;;  %v1015_v25 = vld [vmem:[%s1289_s9 + $0x18] sm:$0xf]  ;;  %v1018_v26 = vld [vmem:[%s1289_s9 + $0x1c] sm:$0xf] }
  0x20   : > { %v1168_v27 = vld [vmem:[#allocation2] sm:$0xff]   ;;  %400 = vst [vmem:[#allocation2 + $0x58] sm:$0xf] %v1017_v24  ;;  %393 = vst [vmem:[#allocation2 + $0x50] sm:$0xf] %v1015_v25  ;;  %v1169_v28 = vld [vmem:[#allocation2 + $0xc] sm:$0xff]  }
  0x21   : > { %403 = vst [vmem:[#allocation2 + $0x5c] sm:$0xf] %v1018_v26  ;;  %1077 = vmatpush3.bf16.msra.mxu0 %v1168_v27  ;;  %v1170_v29 = vld [vmem:[#allocation2 + $0x8] ss:$0 sps:$4 sm:$0xff]   ;;  %1085 = vmatpush3.bf16.msra.mxu1 %v1169_v28  ;;  %v1171_v30 = vld [vmem:[#allocation2 + $0x14] ss:$0 sps:$4 sm:$0xff]  }
  0x22   : > { %1078 = vmatprep.subr.bf16.mxu0 %v1208_v0  ;;  %1086 = vmatprep.subr.bf16.mxu1 %v1208_v0  ;;  %v427_v31 = vsel %vm425_vm1, %v1170_v29, 0  ;;  %v484_v32 = vsel %vm425_vm1, %v1171_v30, 0  ;;  %v1172_v34 = vld [vmem:[#allocation2 + $0x18] sm:$0xff]   ;;  %v1173_v35 = vld [vmem:[#allocation2 + $0x24] sm:$0xff]   ;;  %v1174_v36 = vld [vmem:[#allocation2 + $0x20] ss:$0 sps:$4 sm:$0xff]  }
  0x23   : > { %v1175_v37 = vld [vmem:[#allocation2 + $0x2c] ss:$0 sps:$4 sm:$0xff]   ;;  %v542_v38 = vsel %vm425_vm1, %v1174_v36, 0  ;;  %v1176_v40 = vld [vmem:[#allocation2 + $0x30] sm:$0xff]   ;;  %v1177_v41 = vld [vmem:[#allocation2 + $0x3c] sm:$0xff]  }
  0x24   : > { %v600_v39 = vsel %vm425_vm1, %v1175_v37, 0  ;;  %v1178_v42 = vld [vmem:[#allocation2 + $0x38] ss:$0 sps:$4 sm:$0xff]   ;;  %v1179_v43 = vld [vmem:[#allocation2 + $0x44] ss:$0 sps:$4 sm:$0xff]  }
  0x25   : > { %1079 = vmatpush3.bf16.msra.mxu0 %v427_v31  ;;  %1087 = vmatpush3.bf16.msra.mxu1 %v484_v32  ;;  %v658_v44 = vsel %vm425_vm1, %v1178_v42, 0  ;;  %v716_v45 = vsel %vm425_vm1, %v1179_v43, 0  ;;  %v1180_v46 = vld [vmem:[#allocation2 + $0x48] sm:$0xff]  }
  0x26   : > { %1092 = vmatprep.subr.bf16.mxu0 %v1208_v0  ;;  %1100 = vmatprep.subr.bf16.mxu1 %v1208_v0 }
  0x27   : > { %v1181_v47 = vld [vmem:[#allocation2 + $0x54] sm:$0xff]   ;;  %v1182_v48 = vld [vmem:[#allocation2 + $0x50] ss:$0 sps:$4 sm:$0xff]  }
  0x28   : > { %1081 = vmatmul.mubr.msk.bf16.vlgmr.msra.gmra.mrb[0].mxu0 %vm421_vm2, %v326_v33  ;;  %1089 = vmatmul.mubr.msk.bf16.vlgmr.msra.gmra.mrb[0].mxu1 %vm421_vm2, %v326_v33  ;;  %v1183_v49 = vld [vmem:[#allocation2 + $0x5c] ss:$0 sps:$4 sm:$0xff]   ;;  %v774_v50 = vsel %vm425_vm1, %v1182_v48, 0 }
  0x29   : > { %1093 = vmatpush3.bf16.msra.mxu0 %v1172_v34  ;;  %1101 = vmatpush3.bf16.msra.mxu1 %v1173_v35  ;;  %v832_v51 = vsel %vm425_vm1, %v1183_v49, 0 }
  0x2a   : > { %1094 = vmatprep.subr.bf16.mxu0 %v1208_v0  ;;  %1102 = vmatprep.subr.bf16.mxu1 %v1208_v0 }
  0x2b   : > { %1096 = vmatprep.mubr.msk.bf16.mxu0 %vm1209_vm0, %v1208_v0  ;;  %1104 = vmatprep.mubr.msk.bf16.mxu1 %vm1209_vm0, %v1208_v0 }
  0x2d   : > { %1095 = vmatpush3.bf16.msra.mxu0 %v542_v38  ;;  %1103 = vmatpush3.bf16.msra.mxu1 %v600_v39 }
  0x2e   : > { %1108 = vmatprep.subr.bf16.mxu0 %v1208_v0  ;;  %1116 = vmatprep.subr.bf16.mxu1 %v1208_v0 }
  0x30   : > { %1097 = vmatmul.mubr.msk.bf16.vlgmr.msra.gmra.mrb[4].mxu0 %vm421_vm2, %v326_v33  ;;  %1105 = vmatmul.mubr.msk.bf16.vlgmr.msra.gmra.mrb[4].mxu1 %vm421_vm2, %v326_v33 }
  0x31   : > { %1109 = vmatpush3.bf16.msra.mxu0 %v1176_v40  ;;  %1117 = vmatpush3.bf16.msra.mxu1 %v1177_v41 }
  0x32   : > { %1110 = vmatprep.subr.bf16.mxu0 %v1208_v0  ;;  %1118 = vmatprep.subr.bf16.mxu1 %v1208_v0 }
  0x33   : > { %1112 = vmatprep.mubr.msk.bf16.mxu0 %vm1209_vm0, %v1208_v0  ;;  %1120 = vmatprep.mubr.msk.bf16.mxu1 %vm1209_vm0, %v1208_v0 }
  0x35   : > { %1111 = vmatpush3.bf16.msra.mxu0 %v658_v44  ;;  %1119 = vmatpush3.bf16.msra.mxu1 %v716_v45 }
  0x36   : > { %1124 = vmatprep.subr.bf16.mxu0 %v1208_v0  ;;  %1132 = vmatprep.subr.bf16.mxu1 %v1208_v0 }
  0x38   : > { %1113 = vmatmul.mubr.msk.bf16.vlgmr.msra.gmra.mrb[8].mxu0 %vm421_vm2, %v326_v33  ;;  %1121 = vmatmul.mubr.msk.bf16.vlgmr.msra.gmra.mrb[8].mxu1 %vm421_vm2, %v326_v33 }
  0x39   : > { %1125 = vmatpush3.bf16.msra.mxu0 %v1180_v46  ;;  %1133 = vmatpush3.bf16.msra.mxu1 %v1181_v47 }
  0x3a   : > { %1126 = vmatprep.subr.bf16.mxu0 %v1208_v0  ;;  %1134 = vmatprep.subr.bf16.mxu1 %v1208_v0 }
  0x3b   : > { %1128 = vmatprep.mubr.msk.bf16.mxu0 %vm1209_vm0, %v1208_v0  ;;  %1136 = vmatprep.mubr.msk.bf16.mxu1 %vm1209_vm0, %v1208_v0 }
  0x3d   : > { %1127 = vmatpush3.bf16.msra.mxu0 %v774_v50  ;;  %1135 = vmatpush3.bf16.msra.mxu1 %v832_v51 }
  0x40   : > { %1129 = vmatmul.mubr.msk.bf16.vlgmr.msra.gmra.mrb[12].mxu0 %vm421_vm2, %v326_v33  ;;  %1137 = vmatmul.mubr.msk.bf16.vlgmr.msra.gmra.mrb[12].mxu1 %vm421_vm2, %v326_v33 }
  0x89   : > { %v410_v52 = vpop.permute.xlu0 %409 }
  0xfb   : > { %v463_v53 = vpop.f32.mrb[0].mxu0  ;;  %v520_v54 = vpop.f32.mrb[0].mxu1 }
  0xfc   : > { %v464_v55 = vadd.f32 %v463_v53, %v410_v52  ;;  %v1082_v56 = vpop.f32.mrb[1].mxu0  ;;  %v521_v57 = vadd.f32 %v520_v54, %v410_v52  ;;  %v1090_v58 = vpop.f32.mrb[1].mxu1 }
  0xfd   : > { %v466_v59 = vpop.f32.mrb[2].mxu0  ;;  %v523_v61 = vpop.f32.mrb[2].mxu1 }
  0xfe   : > { %v469_v60 = vpack.c.bf16 %v464_v55, %v464_v55  ;;  %v1083_v62 = vpop.f32.mrb[3].mxu0  ;;  %v526_v63 = vpack.c.bf16 %v521_v57, %v521_v57  ;;  %v1091_v0 = vpop.f32.mrb[3].mxu1 }
 0x100   : > { %470 = vst [vmem:[%s1361_s14] sm:$0xf] %v469_v60  ;;  %1025 = vst [vmem:[%s1361_s14 + $0x4] sm:$0xf] %v526_v63 }
 0x103   : > { %v578_v1 = vpop.f32.mrb[4].mxu0  ;;  %v636_v3 = vpop.f32.mrb[4].mxu1 }
 0x104   : > { %v579_v2 = vadd.f32 %v578_v1, %v410_v52  ;;  %v1098_v4 = vpop.f32.mrb[5].mxu0  ;;  %v637_v5 = vadd.f32 %v636_v3, %v410_v52  ;;  %v1106_v6 = vpop.f32.mrb[5].mxu1 }
 0x105   : > { %v581_v7 = vpop.f32.mrb[6].mxu0  ;;  %v639_v9 = vpop.f32.mrb[6].mxu1 }
 0x106   : > { %v584_v8 = vpack.c.bf16 %v579_v2, %v579_v2  ;;  %v1099_v10 = vpop.f32.mrb[7].mxu0  ;;  %v642_v11 = vpack.c.bf16 %v637_v5, %v637_v5  ;;  %v1107_v12 = vpop.f32.mrb[7].mxu1 }
 0x108   : > { %1029 = vst [vmem:[%s1361_s14 + $0x8] sm:$0xf] %v584_v8  ;;  %1033 = vst [vmem:[%s1361_s14 + $0xc] sm:$0xf] %v642_v11 }
 0x10b   : > { %v694_v13 = vpop.f32.mrb[8].mxu0  ;;  %v752_v15 = vpop.f32.mrb[8].mxu1 }
 0x10c   : > { %v695_v14 = vadd.f32 %v694_v13, %v410_v52  ;;  %v1114_v16 = vpop.f32.mrb[9].mxu0  ;;  %v753_v17 = vadd.f32 %v752_v15, %v410_v52  ;;  %v1122_v18 = vpop.f32.mrb[9].mxu1 }
 0x10d   : > { %v697_v19 = vpop.f32.mrb[10].mxu0  ;;  %v755_v21 = vpop.f32.mrb[10].mxu1 }
 0x10e   : > { %v700_v20 = vpack.c.bf16 %v695_v14, %v695_v14  ;;  %v1115_v22 = vpop.f32.mrb[11].mxu0  ;;  %v758_v23 = vpack.c.bf16 %v753_v17, %v753_v17  ;;  %v1123_v24 = vpop.f32.mrb[11].mxu1 }
 0x110   : > { %1037 = vst [vmem:[%s1361_s14 + $0x10] sm:$0xf] %v700_v20  ;;  %1041 = vst [vmem:[%s1361_s14 + $0x14] sm:$0xf] %v758_v23 }
 0x113   : > { %v810_v25 = vpop.f32.mrb[12].mxu0  ;;  %v868_v27 = vpop.f32.mrb[12].mxu1 }
 0x114   : > { %v811_v26 = vadd.f32 %v810_v25, %v410_v52  ;;  %v1130_v28 = vpop.f32.mrb[13].mxu0  ;;  %v869_v29 = vadd.f32 %v868_v27, %v410_v52  ;;  %v1138_v30 = vpop.f32.mrb[13].mxu1 }
 0x115   : > { %v813_v31 = vpop.f32.mrb[14].mxu0  ;;  %v871_v33 = vpop.f32.mrb[14].mxu1 }
 0x116   : > { %v816_v32 = vpack.c.bf16 %v811_v26, %v811_v26  ;;  %v1131_v34 = vpop.f32.mrb[15].mxu0  ;;  %v874_v35 = vpack.c.bf16 %v869_v29, %v869_v29  ;;  %v1139_v36 = vpop.f32.mrb[15].mxu1 }
 0x118   : > { %1045 = vst [vmem:[%s1361_s14 + $0x18] sm:$0xf] %v816_v32  ;;  %1049 = vst [vmem:[%s1361_s14 + $0x1c] sm:$0xf] %v874_v35 }
 0x119 PF: > { %s15_s20 = sadd.s32 1, %s1206_s20   ;;  %s1386_s18 = smov %s1202_s19 }
 0x11a   : > { %p12_p5 = scmp.ge.s32.totalorder %s15_s20, 4   ;;  %s1387_s19 = smov %s1389_s21 }
 0x11c   :  { %14 = sbr.rel (!%p12_p5) target bundleno = 2 (0x2), region = 111 }

</bundles_post_ra>
